<compile_context>
chip_gen: v7x
topology: tpu7x:2x2x1
jax: 0.10.0
libtpu: 0.0.40
codegen_flags: <defaults>
</compile_context>

<pallas_src>
import math

import jax
import jax.numpy as jnp
from jax.experimental import pallas as pl
from jax.experimental.pallas import tpu as pltpu

LOG_2PI = math.log(2.0 * math.pi)


def _round_up(n, m):
    return ((n + m - 1) // m) * m


def flowvae_kernel(
    x_ref, eps_ref,
    w1_ref, b1_ref, w2_ref, b2_ref,
    wmv_ref, bmv_ref,
    flow_scale_ref, flow_shift_ref, kl_const_ref,
    wd1_ref, bd1_ref, wd2_ref, bd2_ref,
    probs_ref, kl_ref,
):
    f32 = jnp.float32
    bf16 = jnp.bfloat16
    dz = eps_ref.shape[-1]

    # ----- encoder: Linear -> ReLU -> Linear -> ReLU (bf16 MXU, f32 accumulate) -----
    x = x_ref[...].astype(bf16)
    h = jnp.dot(x, w1_ref[...], preferred_element_type=f32) + b1_ref[...]
    h = jnp.maximum(h, 0.0)
    h = jnp.dot(h.astype(bf16), w2_ref[...], preferred_element_type=f32) + b2_ref[...]
    h = jnp.maximum(h, 0.0)

    # ----- fused mu / log_var head -----
    mv = jnp.dot(h.astype(bf16), wmv_ref[...], preferred_element_type=f32) + bmv_ref[...]
    mu = mv[:, :dz]
    log_var = mv[:, dz:]

    # ----- reparameterised sample (f32 elementwise) -----
    sigma = jnp.exp(0.5 * log_var)
    z = mu + eps_ref[...] * sigma

    # ----- composed affine flows: z_f = z * exp(sum_k s_k) + composed_t -----
    zf = z * flow_scale_ref[...] + flow_shift_ref[...]

    # ----- KL -----
    # kl = -sum(prior.log_prob(z_f)) + sum(logq) - logp_final
    # with logq from N(mu, sigma) at z = mu + eps*sigma:  sum(logq) == logp_before_flows
    # exactly, and logp_final = logp_before_flows - sum_k sum(s_k), hence
    # kl = 0.5*sum(z_f^2) + 0.5*dz*log(2pi) + sum_k sum(s_k)
    # (constant terms are pre-baked into kl_const by the wrapper).
    kl = 0.5 * jnp.sum(zf * zf, axis=-1, keepdims=True)          # (TB, 1)
    kl_ref[...] = kl + kl_const_ref[...]                          # lane-dense (TB, 128)

    # ----- decoder: Linear -> ReLU -> Linear -> Bernoulli probs -----
    hd = jnp.dot(zf.astype(bf16), wd1_ref[...], preferred_element_type=f32) + bd1_ref[...]
    hd = jnp.maximum(hd, 0.0)
    logits = jnp.dot(hd.astype(bf16), wd2_ref[...], preferred_element_type=f32) + bd2_ref[...]
    probs_ref[...] = jax.nn.sigmoid(logits)


def flowvae_forward(x_flat, eps, params, *, tb=8):
    """x_flat: (B, C*H*W) f32, eps: (B, dim_z) f32. Returns (probs (B, d_in), kl (B,))."""
    f32, bf16 = jnp.float32, jnp.bfloat16
    B, d_in = x_flat.shape
    dim_z = eps.shape[-1]

    d_in_p = _round_up(d_in, 128)        # lane-dense matmuls / stores
    Bp = _round_up(B, tb)                # full sublanes per vreg / MXU pass

    # --- pad activations ---
    xp = jnp.zeros((Bp, d_in_p), f32).at[:B, :d_in].set(x_flat)
    epsp = jnp.zeros((Bp, dim_z), f32).at[:B].set(eps)

    # --- weights: pad + bf16 cast (halves HBM/VMEM traffic; MXU is bf16-native) ---
    w1 = jnp.zeros((d_in_p, params["w1"].shape[1]), f32).at[:d_in].set(params["w1"]).astype(bf16)
    b1 = params["b1"].astype(f32)
    w2 = params["w2"].astype(bf16)
    b2 = params["b2"].astype(f32)
    wmv = jnp.concatenate([params["wmu"], params["wvar"]], axis=1).astype(bf16)
    bmv = jnp.concatenate([params["bmu"], params["bvar"]], axis=1).astype(f32)
    wd1 = params["wd1"].astype(bf16)
    bd1 = params["bd1"].astype(f32)
    wd2 = jnp.zeros((params["wd2"].shape[0], d_in_p), f32).at[:, :d_in].set(params["wd2"]).astype(bf16)
    bd2 = jnp.zeros((1, d_in_p), f32).at[:, :d_in].set(params["bd2"])

    # --- compose the parameter-affine flows into one scale/shift (exact) ---
    fs, ft = params["flow_s"], params["flow_t"]
    scale = jnp.ones((1, dim_z), f32)
    shift = jnp.zeros((1, dim_z), f32)
    for k in range(fs.shape[0]):
        e = jnp.exp(fs[k:k + 1, :])
        scale = scale * e
        shift = shift * e + ft[k:k + 1, :]
    kl_const = jnp.full((1, 128), 0.5 * dim_z * LOG_2PI, f32) + jnp.sum(fs)

    args = (xp, epsp, w1, b1, w2, b2, wmv, bmv, scale, shift, kl_const,
            wd1, bd1, wd2, bd2)

    def batch_spec(shape):
        return pl.BlockSpec((tb,) + tuple(shape[1:]),
                            lambda i, _nd=len(shape): (i,) + (0,) * (_nd - 1))

    def resident_spec(shape):
        return pl.BlockSpec(tuple(shape), lambda i, _nd=len(shape): (0,) * _nd)

    in_specs = ([batch_spec(xp.shape), batch_spec(epsp.shape)]
                + [resident_spec(a.shape) for a in args[2:]])
    out_specs = (batch_spec((Bp, d_in_p)), batch_spec((Bp, 128)))

    # --- explicit VMEM budget: resident weights + double-buffered activation tiles ---
    def nbytes(shape, dtype):
        n = 1
        for s in shape:
            n *= int(s)
        return n * jnp.dtype(dtype).itemsize

    vmem = 2 * (2 * nbytes((tb, d_in_p), f32)       # x tile + probs tile
                + nbytes((tb, dim_z), f32)          # eps tile
                + nbytes((tb, 128), f32))           # kl tile
    vmem += 2 * sum(nbytes(a.shape, a.dtype) for a in args[2:])   # resident params
    vmem_limit = int(min(max(vmem + (2 << 20), 8 << 20), 48 << 20))

    probs_p, kl_p = pl.pallas_call(
        flowvae_kernel,
        out_shape=(
            jax.ShapeDtypeStruct((Bp, d_in_p), f32),   # Bernoulli probs (padded)
            jax.ShapeDtypeStruct((Bp, 128), f32),      # per-sample KL, lane-dense slab
        ),
        grid=(Bp // tb,),
        in_specs=in_specs,
        out_specs=out_specs,
        compiler_params=pltpu.CompilerParams(
            dimension_semantics=("parallel",),         # shards batch across TCs on v7x
            vmem_limit_bytes=vmem_limit,
        ),
    )(*args)
    return probs_p[:B, :d_in], kl_p[:B, 0]


def make_params(key, d_in, dim_h, dim_z, n_flows):
    ks = jax.random.split(key, 12)

    def lin(k, fan_in, fan_out):
        kw, kb = jax.random.split(k)
        lim = 1.0 / math.sqrt(fan_in)
        w = jax.random.uniform(kw, (fan_in, fan_out), jnp.float32, -lim, lim)
        b = jax.random.uniform(kb, (1, fan_out), jnp.float32, -lim, lim)
        return w, b

    p = {}
    p["w1"], p["b1"] = lin(ks[0], d_in, 2 * dim_h)
    p["w2"], p["b2"] = lin(ks[1], 2 * dim_h, dim_h)
    p["wmu"], p["bmu"] = lin(ks[2], dim_h, dim_z)
    p["wvar"], p["bvar"] = lin(ks[3], dim_h, dim_z)
    p["flow_s"] = 0.1 * jax.random.normal(ks[4], (n_flows, dim_z), jnp.float32)
    p["flow_t"] = 0.1 * jax.random.normal(ks[5], (n_flows, dim_z), jnp.float32)
    p["wd1"], p["bd1"] = lin(ks[6], dim_z, dim_h)
    p["wd2"], p["bd2"] = lin(ks[7], dim_h, d_in)
    return p


def _reference(x_flat, eps, params, use_bf16):
    """Pure-JAX reference mirroring the PyTorch forward.  With use_bf16=True the
    matmul operands are cast to bf16 exactly like the kernel (f32 accumulation)."""
    f32, bf16 = jnp.float32, jnp.bfloat16

    def dot(a, w):
        if use_bf16:
            return jnp.dot(a.astype(bf16), w.astype(bf16), preferred_element_type=f32)
        return jnp.dot(a, w, preferred_element_type=f32)

    h = jnp.maximum(dot(x_flat, params["w1"]) + params["b1"], 0.0)
    h = jnp.maximum(dot(h, params["w2"]) + params["b2"], 0.0)
    mu = dot(h, params["wmu"]) + params["bmu"]
    log_var = dot(h, params["wvar"]) + params["bvar"]
    sigma = jnp.exp(0.5 * log_var)
    z = mu + eps * sigma
    u2 = ((z - mu) / sigma) ** 2
    logq = -jnp.log(sigma) - 0.5 * LOG_2PI - 0.5 * u2
    logp = -0.5 * jnp.sum(2.0 * jnp.log(sigma) + LOG_2PI + u2, axis=1)
    for k in range(params["flow_s"].shape[0]):
        s, t = params["flow_s"][k], params["flow_t"][k]
        z = z * jnp.exp(s) + t
        logp = logp - jnp.sum(s)
    prior_lp = -0.5 * z * z - 0.5 * LOG_2PI
    kl = -jnp.sum(prior_lp, axis=-1) + jnp.sum(logq, axis=-1) - logp
    hd = jnp.maximum(dot(z, params["wd1"]) + params["bd1"], 0.0)
    probs = jax.nn.sigmoid(dot(hd, params["wd2"]) + params["bd2"])
    return probs, kl


if __name__ == "__main__":
    # small shapes consistent with the module
    B = 4
    img_size = (1, 16, 16)                 # (C, H, W)
    dim_h, dim_z, n_flows = 32, 8, 2
    d_in = img_size[0] * img_size[1] * img_size[2]

    key = jax.random.PRNGKey(0)
    kx, keps, kp = jax.random.split(key, 3)

    x = jax.random.normal(kx, (B,) + img_size, jnp.float32)      # NCHW
    x_flat = x.reshape(B, d_in)                                  # row-major flatten
    eps = jax.random.normal(keps, (B, dim_z), jnp.float32)       # randn_like(mu)
    params = make_params(kp, d_in, dim_h, dim_z, n_flows)

    probs, kl = flowvae_forward(x_flat, eps, params)
    jax.block_until_ready((probs, kl))

    # tight check vs a reference that mirrors the kernel's bf16 matmul inputs
    probs_b, kl_b = _reference(x_flat, eps, params, use_bf16=True)
    assert jnp.allclose(probs, probs_b, atol=2e-3, rtol=2e-3), \
        float(jnp.max(jnp.abs(probs - probs_b)))
    assert jnp.allclose(kl, kl_b, atol=2e-2, rtol=2e-2), \
        float(jnp.max(jnp.abs(kl - kl_b)))

    # loose check vs the full-f32 reference (bf16 matmul quantization only)
    probs_f, kl_f = _reference(x_flat, eps, params, use_bf16=False)
    assert jnp.allclose(probs, probs_f, atol=5e-2, rtol=5e-2)
    assert jnp.allclose(kl, kl_f, atol=1e-1, rtol=5e-2)

    # TODO(synk): torch.distributions Normal/Bernoulli objects have no kernel
    # equivalent; the kernel returns Bernoulli probs and per-sample KL directly.
    print("KERNEL_OK")
</pallas_src>

<mosaic_0001>
module attributes {stable_mosaic.version = 11 : i64} {
  func.func @flowvae_kernel(%arg0: i32, %arg1: memref<8x256xf32, #tpu.memory_space<vmem>>, %arg2: memref<8x8xf32, #tpu.memory_space<vmem>>, %arg3: memref<256x64xbf16, #tpu.memory_space<vmem>>, %arg4: memref<1x64xf32, #tpu.memory_space<vmem>>, %arg5: memref<64x32xbf16, #tpu.memory_space<vmem>>, %arg6: memref<1x32xf32, #tpu.memory_space<vmem>>, %arg7: memref<32x16xbf16, #tpu.memory_space<vmem>>, %arg8: memref<1x16xf32, #tpu.memory_space<vmem>>, %arg9: memref<1x8xf32, #tpu.memory_space<vmem>>, %arg10: memref<1x8xf32, #tpu.memory_space<vmem>>, %arg11: memref<1x128xf32, #tpu.memory_space<vmem>>, %arg12: memref<8x32xbf16, #tpu.memory_space<vmem>>, %arg13: memref<1x32xf32, #tpu.memory_space<vmem>>, %arg14: memref<32x256xbf16, #tpu.memory_space<vmem>>, %arg15: memref<1x256xf32, #tpu.memory_space<vmem>>, %arg16: memref<8x256xf32, #tpu.memory_space<vmem>>, %arg17: memref<8x128xf32, #tpu.memory_space<vmem>>) attributes {dimension_semantics = [#tpu.dimension_semantics<parallel>], iteration_bounds = array<i64: 1>, scalar_prefetch = 0 : i64, scratch_operands = 0 : i64, tpu.core_type = #tpu.core_type<tc>, window_params = [{transform_indices = @transform_0, window_bounds = array<i64: 8, 256>}, {transform_indices = @transform_1, window_bounds = array<i64: 8, 8>}, {pipeline_mode = #tpu.pipeline_mode<synchronous>, transform_indices = @transform_2, window_bounds = array<i64: 256, 64>}, {pipeline_mode = #tpu.pipeline_mode<synchronous>, transform_indices = @transform_3, window_bounds = array<i64: 1, 64>}, {pipeline_mode = #tpu.pipeline_mode<synchronous>, transform_indices = @transform_4, window_bounds = array<i64: 64, 32>}, {pipeline_mode = #tpu.pipeline_mode<synchronous>, transform_indices = @transform_5, window_bounds = array<i64: 1, 32>}, {pipeline_mode = #tpu.pipeline_mode<synchronous>, transform_indices = @transform_6, window_bounds = array<i64: 32, 16>}, {pipeline_mode = #tpu.pipeline_mode<synchronous>, transform_indices = @transform_7, window_bounds = array<i64: 1, 16>}, {pipeline_mode = #tpu.pipeline_mode<synchronous>, transform_indices = @transform_8, window_bounds = array<i64: 1, 8>}, {pipeline_mode = #tpu.pipeline_mode<synchronous>, transform_indices = @transform_9, window_bounds = array<i64: 1, 8>}, {pipeline_mode = #tpu.pipeline_mode<synchronous>, transform_indices = @transform_10, window_bounds = array<i64: 1, 128>}, {pipeline_mode = #tpu.pipeline_mode<synchronous>, transform_indices = @transform_11, window_bounds = array<i64: 8, 32>}, {pipeline_mode = #tpu.pipeline_mode<synchronous>, transform_indices = @transform_12, window_bounds = array<i64: 1, 32>}, {pipeline_mode = #tpu.pipeline_mode<synchronous>, transform_indices = @transform_13, window_bounds = array<i64: 32, 256>}, {pipeline_mode = #tpu.pipeline_mode<synchronous>, transform_indices = @transform_14, window_bounds = array<i64: 1, 256>}, {transform_indices = @transform_15, window_bounds = array<i64: 8, 256>}, {transform_indices = @transform_16, window_bounds = array<i64: 8, 128>}]} {
    %c0 = arith.constant 0 : index
    %c0_0 = arith.constant 0 : index
    %0 = vector.load %arg1[%c0, %c0_0] : memref<8x256xf32, #tpu.memory_space<vmem>>, vector<8x256xf32>
    %1 = arith.truncf %0 : vector<8x256xf32> to vector<8x256xbf16>
    %c0_1 = arith.constant 0 : index
    %c0_2 = arith.constant 0 : index
    %2 = vector.load %arg3[%c0_1, %c0_2] : memref<256x64xbf16, #tpu.memory_space<vmem>>, vector<256x64xbf16>
    %cst = arith.constant dense<0.000000e+00> : vector<8x64xf32>
    %3 = tpu.matmul %1, %2, %cst {dimension_numbers = #tpu.dot_dimension_numbers<[1], [0], [0], [1], [0, 0, 1, 1], [], []>} : vector<8x256xbf16>, vector<256x64xbf16>, vector<8x64xf32> -> vector<8x64xf32>
    %c0_3 = arith.constant 0 : index
    %c0_4 = arith.constant 0 : index
    %4 = vector.load %arg4[%c0_3, %c0_4] : memref<1x64xf32, #tpu.memory_space<vmem>>, vector<1x64xf32>
    %5 = vector.broadcast %4 : vector<1x64xf32> to vector<8x64xf32>
    %6 = arith.addf %3, %5 : vector<8x64xf32>
    %cst_5 = arith.constant 0.000000e+00 : f32
    %7 = vector.broadcast %cst_5 : f32 to vector<8x64xf32>
    %8 = arith.maximumf %6, %7 : vector<8x64xf32>
    %9 = arith.truncf %8 : vector<8x64xf32> to vector<8x64xbf16>
    %c0_6 = arith.constant 0 : index
    %c0_7 = arith.constant 0 : index
    %10 = vector.load %arg5[%c0_6, %c0_7] : memref<64x32xbf16, #tpu.memory_space<vmem>>, vector<64x32xbf16>
    %cst_8 = arith.constant dense<0.000000e+00> : vector<8x32xf32>
    %11 = tpu.matmul %9, %10, %cst_8 {dimension_numbers = #tpu.dot_dimension_numbers<[1], [0], [0], [1], [0, 0, 1, 1], [], []>} : vector<8x64xbf16>, vector<64x32xbf16>, vector<8x32xf32> -> vector<8x32xf32>
    %c0_9 = arith.constant 0 : index
    %c0_10 = arith.constant 0 : index
    %12 = vector.load %arg6[%c0_9, %c0_10] : memref<1x32xf32, #tpu.memory_space<vmem>>, vector<1x32xf32>
    %13 = vector.broadcast %12 : vector<1x32xf32> to vector<8x32xf32>
    %14 = arith.addf %11, %13 : vector<8x32xf32>
    %cst_11 = arith.constant 0.000000e+00 : f32
    %15 = vector.broadcast %cst_11 : f32 to vector<8x32xf32>
    %16 = arith.maximumf %14, %15 : vector<8x32xf32>
    %17 = arith.truncf %16 : vector<8x32xf32> to vector<8x32xbf16>
    %c0_12 = arith.constant 0 : index
    %c0_13 = arith.constant 0 : index
    %18 = vector.load %arg7[%c0_12, %c0_13] : memref<32x16xbf16, #tpu.memory_space<vmem>>, vector<32x16xbf16>
    %cst_14 = arith.constant dense<0.000000e+00> : vector<8x16xf32>
    %19 = tpu.matmul %17, %18, %cst_14 {dimension_numbers = #tpu.dot_dimension_numbers<[1], [0], [0], [1], [0, 0, 1, 1], [], []>} : vector<8x32xbf16>, vector<32x16xbf16>, vector<8x16xf32> -> vector<8x16xf32>
    %c0_15 = arith.constant 0 : index
    %c0_16 = arith.constant 0 : index
    %20 = vector.load %arg8[%c0_15, %c0_16] : memref<1x16xf32, #tpu.memory_space<vmem>>, vector<1x16xf32>
    %21 = vector.broadcast %20 : vector<1x16xf32> to vector<8x16xf32>
    %22 = arith.addf %19, %21 : vector<8x16xf32>
    %23 = vector.extract_strided_slice %22 {offsets = [0, 0], sizes = [8, 8], strides = [1, 1]} : vector<8x16xf32> to vector<8x8xf32>
    %24 = vector.extract_strided_slice %22 {offsets = [0, 8], sizes = [8, 8], strides = [1, 1]} : vector<8x16xf32> to vector<8x8xf32>
    %cst_17 = arith.constant 5.000000e-01 : f32
    %25 = vector.broadcast %cst_17 : f32 to vector<8x8xf32>
    %26 = arith.mulf %25, %24 : vector<8x8xf32>
    %27 = math.exp %26 : vector<8x8xf32>
    %c0_18 = arith.constant 0 : index
    %c0_19 = arith.constant 0 : index
    %28 = vector.load %arg2[%c0_18, %c0_19] : memref<8x8xf32, #tpu.memory_space<vmem>>, vector<8x8xf32>
    %29 = arith.mulf %28, %27 : vector<8x8xf32>
    %30 = arith.addf %23, %29 : vector<8x8xf32>
    %c0_20 = arith.constant 0 : index
    %c0_21 = arith.constant 0 : index
    %31 = vector.load %arg9[%c0_20, %c0_21] : memref<1x8xf32, #tpu.memory_space<vmem>>, vector<1x8xf32>
    %32 = vector.broadcast %31 : vector<1x8xf32> to vector<8x8xf32>
    %33 = arith.mulf %30, %32 : vector<8x8xf32>
    %c0_22 = arith.constant 0 : index
    %c0_23 = arith.constant 0 : index
    %34 = vector.load %arg10[%c0_22, %c0_23] : memref<1x8xf32, #tpu.memory_space<vmem>>, vector<1x8xf32>
    %35 = vector.broadcast %34 : vector<1x8xf32> to vector<8x8xf32>
    %36 = arith.addf %33, %35 : vector<8x8xf32>
    %37 = arith.mulf %36, %36 : vector<8x8xf32>
    %cst_24 = arith.constant dense<0.000000e+00> : vector<8xf32>
    %38 = vector.multi_reduction <add>, %37, %cst_24 [1] : vector<8x8xf32> to vector<8xf32>
    %39 = vector.shape_cast %38 : vector<8xf32> to vector<8x1xf32>
    %cst_25 = arith.constant 5.000000e-01 : f32
    %40 = vector.broadcast %cst_25 : f32 to vector<8x1xf32>
    %41 = arith.mulf %40, %39 : vector<8x1xf32>
    %c0_26 = arith.constant 0 : index
    %c0_27 = arith.constant 0 : index
    %42 = vector.load %arg11[%c0_26, %c0_27] : memref<1x128xf32, #tpu.memory_space<vmem>>, vector<1x128xf32>
    %43 = vector.broadcast %41 : vector<8x1xf32> to vector<8x128xf32>
    %44 = vector.broadcast %42 : vector<1x128xf32> to vector<8x128xf32>
    %45 = arith.addf %43, %44 : vector<8x128xf32>
    %c0_28 = arith.constant 0 : index
    %c0_29 = arith.constant 0 : index
    %46 = vector.load %arg17[%c0_28, %c0_29] : memref<8x128xf32, #tpu.memory_space<vmem>>, vector<8x128xf32>
    tpu.vector_store %arg17[%c0_28, %c0_29], %45 {strides = array<i32>} : memref<8x128xf32, #tpu.memory_space<vmem>>, vector<8x128xf32>,
    %47 = arith.truncf %36 : vector<8x8xf32> to vector<8x8xbf16>
    %c0_30 = arith.constant 0 : index
    %c0_31 = arith.constant 0 : index
    %48 = vector.load %arg12[%c0_30, %c0_31] : memref<8x32xbf16, #tpu.memory_space<vmem>>, vector<8x32xbf16>
    %cst_32 = arith.constant dense<0.000000e+00> : vector<8x32xf32>
    %49 = tpu.matmul %47, %48, %cst_32 {dimension_numbers = #tpu.dot_dimension_numbers<[1], [0], [0], [1], [0, 0, 1, 1], [], []>} : vector<8x8xbf16>, vector<8x32xbf16>, vector<8x32xf32> -> vector<8x32xf32>
    %c0_33 = arith.constant 0 : index
    %c0_34 = arith.constant 0 : index
    %50 = vector.load %arg13[%c0_33, %c0_34] : memref<1x32xf32, #tpu.memory_space<vmem>>, vector<1x32xf32>
    %51 = vector.broadcast %50 : vector<1x32xf32> to vector<8x32xf32>
    %52 = arith.addf %49, %51 : vector<8x32xf32>
    %cst_35 = arith.constant 0.000000e+00 : f32
    %53 = vector.broadcast %cst_35 : f32 to vector<8x32xf32>
    %54 = arith.maximumf %52, %53 : vector<8x32xf32>
    %55 = arith.truncf %54 : vector<8x32xf32> to vector<8x32xbf16>
    %c0_36 = arith.constant 0 : index
    %c0_37 = arith.constant 0 : index
    %56 = vector.load %arg14[%c0_36, %c0_37] : memref<32x256xbf16, #tpu.memory_space<vmem>>, vector<32x256xbf16>
    %cst_38 = arith.constant dense<0.000000e+00> : vector<8x256xf32>
    %57 = tpu.matmul %55, %56, %cst_38 {dimension_numbers = #tpu.dot_dimension_numbers<[1], [0], [0], [1], [0, 0, 1, 1], [], []>} : vector<8x32xbf16>, vector<32x256xbf16>, vector<8x256xf32> -> vector<8x256xf32>
    %c0_39 = arith.constant 0 : index
    %c0_40 = arith.constant 0 : index
    %58 = vector.load %arg15[%c0_39, %c0_40] : memref<1x256xf32, #tpu.memory_space<vmem>>, vector<1x256xf32>
    %59 = vector.broadcast %58 : vector<1x256xf32> to vector<8x256xf32>
    %60 = arith.addf %57, %59 : vector<8x256xf32>
    %61 = arith.negf %60 : vector<8x256xf32>
    %62 = math.exp %61 : vector<8x256xf32>
    %cst_41 = arith.constant 1.000000e+00 : f32
    %63 = vector.broadcast %cst_41 : f32 to vector<8x256xf32>
    %64 = arith.addf %63, %62 : vector<8x256xf32>
    %65 = arith.divf %63, %64 : vector<8x256xf32>
    %c0_42 = arith.constant 0 : index
    %c0_43 = arith.constant 0 : index
    %66 = vector.load %arg16[%c0_42, %c0_43] : memref<8x256xf32, #tpu.memory_space<vmem>>, vector<8x256xf32>
    tpu.vector_store %arg16[%c0_42, %c0_43], %65 {strides = array<i32>} : memref<8x256xf32, #tpu.memory_space<vmem>>, vector<8x256xf32>,
    return
  }
  func.func @transform_0(%arg0: i32) -> (i32, i32) {
    %c0_i32 = arith.constant 0 : i32
    %c0_i32_0 = arith.constant 0 : i32
    return %arg0, %c0_i32 : i32, i32
  }
  func.func @transform_1(%arg0: i32) -> (i32, i32) {
    %c0_i32 = arith.constant 0 : i32
    %c0_i32_0 = arith.constant 0 : i32
    return %arg0, %c0_i32 : i32, i32
  }
  func.func @transform_2(%arg0: i32) -> (i32, i32) {
    %c0_i32 = arith.constant 0 : i32
    %c0_i32_0 = arith.constant 0 : i32
    %c0_i32_1 = arith.constant 0 : i32
    return %c0_i32, %c0_i32_0 : i32, i32
  }
  func.func @transform_3(%arg0: i32) -> (i32, i32) {
    %c0_i32 = arith.constant 0 : i32
    %c0_i32_0 = arith.constant 0 : i32
    %c0_i32_1 = arith.constant 0 : i32
    return %c0_i32, %c0_i32_0 : i32, i32
  }
  func.func @transform_4(%arg0: i32) -> (i32, i32) {
    %c0_i32 = arith.constant 0 : i32
    %c0_i32_0 = arith.constant 0 : i32
    %c0_i32_1 = arith.constant 0 : i32
    return %c0_i32, %c0_i32_0 : i32, i32
  }
  func.func @transform_5(%arg0: i32) -> (i32, i32) {
    %c0_i32 = arith.constant 0 : i32
    %c0_i32_0 = arith.constant 0 : i32
    %c0_i32_1 = arith.constant 0 : i32
    return %c0_i32, %c0_i32_0 : i32, i32
  }
  func.func @transform_6(%arg0: i32) -> (i32, i32) {
    %c0_i32 = arith.constant 0 : i32
    %c0_i32_0 = arith.constant 0 : i32
    %c0_i32_1 = arith.constant 0 : i32
    return %c0_i32, %c0_i32_0 : i32, i32
  }
  func.func @transform_7(%arg0: i32) -> (i32, i32) {
    %c0_i32 = arith.constant 0 : i32
    %c0_i32_0 = arith.constant 0 : i32
    %c0_i32_1 = arith.constant 0 : i32
    return %c0_i32, %c0_i32_0 : i32, i32
  }
  func.func @transform_8(%arg0: i32) -> (i32, i32) {
    %c0_i32 = arith.constant 0 : i32
    %c0_i32_0 = arith.constant 0 : i32
    %c0_i32_1 = arith.constant 0 : i32
    return %c0_i32, %c0_i32_0 : i32, i32
  }
  func.func @transform_9(%arg0: i32) -> (i32, i32) {
    %c0_i32 = arith.constant 0 : i32
    %c0_i32_0 = arith.constant 0 : i32
    %c0_i32_1 = arith.constant 0 : i32
    return %c0_i32, %c0_i32_0 : i32, i32
  }
  func.func @transform_10(%arg0: i32) -> (i32, i32) {
    %c0_i32 = arith.constant 0 : i32
    %c0_i32_0 = arith.constant 0 : i32
    %c0_i32_1 = arith.constant 0 : i32
    return %c0_i32, %c0_i32_0 : i32, i32
  }
  func.func @transform_11(%arg0: i32) -> (i32, i32) {
    %c0_i32 = arith.constant 0 : i32
    %c0_i32_0 = arith.constant 0 : i32
    %c0_i32_1 = arith.constant 0 : i32
    return %c0_i32, %c0_i32_0 : i32, i32
  }
  func.func @transform_12(%arg0: i32) -> (i32, i32) {
    %c0_i32 = arith.constant 0 : i32
    %c0_i32_0 = arith.constant 0 : i32
    %c0_i32_1 = arith.constant 0 : i32
    return %c0_i32, %c0_i32_0 : i32, i32
  }
  func.func @transform_13(%arg0: i32) -> (i32, i32) {
    %c0_i32 = arith.constant 0 : i32
    %c0_i32_0 = arith.constant 0 : i32
    %c0_i32_1 = arith.constant 0 : i32
    return %c0_i32, %c0_i32_0 : i32, i32
  }
  func.func @transform_14(%arg0: i32) -> (i32, i32) {
    %c0_i32 = arith.constant 0 : i32
    %c0_i32_0 = arith.constant 0 : i32
    %c0_i32_1 = arith.constant 0 : i32
    return %c0_i32, %c0_i32_0 : i32, i32
  }
  func.func @transform_15(%arg0: i32) -> (i32, i32) {
    %c0_i32 = arith.constant 0 : i32
    %c0_i32_0 = arith.constant 0 : i32
    return %arg0, %c0_i32 : i32, i32
  }
  func.func @transform_16(%arg0: i32) -> (i32, i32) {
    %c0_i32 = arith.constant 0 : i32
    %c0_i32_0 = arith.constant 0 : i32
    return %arg0, %c0_i32 : i32, i32
  }
}

</mosaic_0001>

<bundles_post_ra>
// kernel: tpu_custom_call.1
= control target key start
LH: loop header
LB: loop body
LE: loop exit
PB: predicated region body
PF: predicated region fallthrough
CT: control target
= control target key end

     0   :  { %s1042_s0 = inlined_call_operand.vmem [shape: f32[8,256], index: 0, kind: input, shape index: {}]   ;;  %s1043_s1 = inlined_call_operand.vmem [shape: f32[8,8], index: 1, kind: input, shape index: {}]   ;;  %s1044_s2 = inlined_call_operand.vmem [shape: bf16[256,64], index: 2, kind: input, shape index: {}]   ;;  %s1045_s3 = inlined_call_operand.vmem [shape: f32[1,64], index: 3, kind: input, shape index: {}]   ;;  %s1046_s4 = inlined_call_operand.vmem [shape: bf16[64,32], index: 4, kind: input, shape index: {}]   ;;  %s1047_s5 = inlined_call_operand.vmem [shape: f32[1,32], index: 5, kind: input, shape index: {}]   ;;  %s1048_s6 = inlined_call_operand.vmem [shape: bf16[32,16], index: 6, kind: input, shape index: {}]   ;;  %s1049_s7 = inlined_call_operand.vmem [shape: f32[1,16], index: 7, kind: input, shape index: {}]   ;;  %s1050_s8 = inlined_call_operand.vmem [shape: f32[1,8], index: 8, kind: input, shape index: {}]   ;;  %s1051_s9 = inlined_call_operand.vmem [shape: f32[1,8], index: 9, kind: input, shape index: {}]   ;;  %s1052_s10 = inlined_call_operand.vmem [shape: f32[1,128], index: 10, kind: input, shape index: {}]   ;;  %s1053_s11 = inlined_call_operand.vmem [shape: bf16[8,32], index: 11, kind: input, shape index: {}]   ;;  %s1054_s12 = inlined_call_operand.vmem [shape: f32[1,32], index: 12, kind: input, shape index: {}]   ;;  %s1055_s13 = inlined_call_operand.vmem [shape: bf16[32,256], index: 13, kind: input, shape index: {}]   ;;  %s1056_s14 = inlined_call_operand.vmem [shape: f32[1,256], index: 14, kind: input, shape index: {}]   ;;  %s1057_s15 = inlined_call_operand.hbm [shape: f32[8,256], index: 15, kind: output, shape index: {0}]   ;;  %s1058_s16 = inlined_call_operand.hbm [shape: f32[8,128], index: 16, kind: output, shape index: {1}]  }
   0x1   :  { %1060 = sst [smem:[#allocation8_spill]] %s1042_s0 }
   0x2   :  { %22 = vsyncpa [#allocation3], 0  ;;  %v712_v0 = vld [vmem:[%s1044_s2 + $0x40] sm:$0xff]   ;;  %v798_v2 = vmov 0.0   ;;  %v714_v3 = vld [vmem:[%s1044_s2 + $0x48] sm:$0xff]   ;;  %s1061_s30 = sld [smem:[#allocation8_spill]] }
   0x3   :  { %v713_v1 = vld [vmem:[%s1044_s2] sm:$0xff]   ;;  %680 = vmatprep.subr.bf16.mxu1 %v798_v2  ;;  %648 = vmatprep.subr.bf16.mxu0 %v712_v0  ;;  %v715_v4 = vld [vmem:[%s1044_s2 + $0x8] sm:$0xff]   ;;  %v716_v5 = vld [vmem:[%s1044_s2 + $0x50] sm:$0xff]  }
   0x4   :  { %649 = vmatpush3.bf16.msra.mxu0 %v713_v1  ;;  %v717_v6 = vld [vmem:[%s1044_s2 + $0x10] sm:$0xff]   ;;  %v718_v7 = vld [vmem:[%s1044_s2 + $0x58] sm:$0xff]   ;;  %v720_v9 = vld [vmem:[%s1044_s2 + $0x60] sm:$0xff]  }
   0x5   :  { %650 = vmatprep.subr.bf16.mxu0 %v714_v3  ;;  %v719_v8 = vld [vmem:[%s1044_s2 + $0x18] sm:$0xff]   ;;  %v721_v10 = vld [vmem:[%s1044_s2 + $0x20] sm:$0xff]   ;;  %v722_v11 = vld [vmem:[%s1044_s2 + $0x68] sm:$0xff]  }
   0x6   :  { %v723_v13 = vld [vmem:[%s1044_s2 + $0x28] sm:$0xff]   ;;  %v728_v15 = vld [vmem:[%s1046_s4] sm:$0xff]   ;;  %v724_v16 = vld [vmem:[%s1044_s2 + $0x70] sm:$0xff]  }
   0x7   :  { %v729_v17 = vld [vmem:[%s1046_s4 + $0x8] sm:$0xff]   ;;  %681 = vmatpush3.bf16.msra.mxu1 %v728_v15 }
   0x8   :  { %651 = vmatpush3.bf16.msra.mxu0 %v715_v4  ;;  %v56_v12 = vld [vmem:[%s1061_s30 + $0x8] sm:$0xff]  ;;  %682 = vmatprep.subr.bf16.mxu1 %v798_v2 }
   0x9   :  { %652 = vmatprep.subr.bf16.mxu0 %v716_v5  ;;  %v58_v14 = vpack.c.bf16 %v56_v12, %v56_v12 }
   0xb   :  { %226 = vmatprep.mubr.bf16.mxu0 %v58_v14 }
   0xc   :  { %653 = vmatpush3.bf16.msra.mxu0 %v717_v6 }
   0xd   :  { %654 = vmatprep.subr.bf16.mxu0 %v718_v7 }
  0x10   :  { %655 = vmatpush3.bf16.msra.mxu0 %v719_v8 }
  0x11   :  { %656 = vmatprep.subr.bf16.mxu0 %v720_v9 }
  0x14   :  { %657 = vmatpush3.bf16.msra.mxu0 %v721_v10 }
  0x15   :  { %658 = vmatprep.subr.bf16.mxu0 %v722_v11 }
  0x16   :  { %23 = vsyncpa [#allocation5], 0  ;;  %v725_v18 = vld [vmem:[%s1044_s2 + $0x30] sm:$0xff]   ;;  %v726_v19 = vld [vmem:[%s1044_s2 + $0x78] sm:$0xff]   ;;  %683 = vmatpush3.bf16.msra.mxu1 %v729_v17  ;;  %vm799_vm0 = vmmov 0   ;;  %vm275_vm1 = vcmask 523264  }
  0x17   :  { %684 = vmatprep.subr.bf16.mxu1 %v798_v2  ;;  %v727_v20 = vld [vmem:[%s1044_s2 + $0x38] sm:$0xff]   ;;  %v55_v21 = vld [vmem:[%s1061_s30] sm:$0xff]  ;;  %v730_v23 = vld [vmem:[%s1046_s4 + $0x10] sm:$0xff]   ;;  %688 = vmatprep.mubr.msk.bf16.mxu1 %vm799_vm0, %v798_v2  ;;  %vm344_vm2 = vcmask 261120   ;;  %vm441_vm3 = vcmask 1043456   ;;  %s800_s28 = smov 120  }
  0x18   :  { %659 = vmatpush3.bf16.msra.mxu0 %v723_v13  ;;  %v57_v22 = vpack.c.bf16 %v55_v21, %v55_v21  ;;  %v731_v24 = vld [vmem:[%s1046_s4 + $0x18] sm:$0xff]   ;;  %v609_v26 = vld [vmem:[%s1045_s3] ss:$0 sm:$0xff]  ;;  %v733_v35 = vld [vmem:[%s1048_s6 + $0x8] sm:$0xff]   ;;  %vm415_vm4 = vcmask 64512   ;;  %v801_v6 = vmov 0  }
  0x19   :  { %660 = vmatprep.subr.bf16.mxu0 %v724_v16  ;;  %v732_v33 = vld [vmem:[%s1048_s6] sm:$0xff]   ;;  %v739_v4 = vld [vmem:[%s1055_s13 + $0x14] ss:$8 sps:$4 sm:$0xff]   ;;  %v737_v5 = vld [vmem:[%s1055_s13 + $0x10] ss:$8 sps:$4 sm:$0xff]  }
  0x1a   :  { %685 = vmatpush3.bf16.msra.mxu1 %v730_v23  ;;  %v626_v36 = vld [vmem:[%s1047_s5] ss:$0 sm:$0xff]  ;;  %v736_v3 = vld [vmem:[%s1055_s13 + $0x4] ss:$8 sps:$4 sm:$0xff]  }
  0x1b   :  { %686 = vmatprep.subr.bf16.mxu1 %v798_v2  ;;  %v632_v44 = vld [vmem:[%s1049_s7] ss:$0 sm:$0xff] }
  0x1c   :  { %661 = vmatpush3.bf16.msra.mxu0 %v725_v18  ;;  %v430_v52 = vld [vmem:[%s1053_s11] sm:$0xf] }
  0x1d   :  { %662 = vmatprep.subr.bf16.mxu0 %v726_v19  ;;  %v443_v53 = vsel %vm441_vm3, %v430_v52, 0  ;;  %v391_v55 = vld [vmem:[%s1043_s1] sm:$0xff] }
  0x1e   :  { %687 = vmatpush3.bf16.msra.mxu1 %v731_v24  ;;  %v636_v58 = vld [vmem:[%s1050_s8] ss:$0 sm:$0xff] }
  0x1f   :  { %692 = vmatprep.subr.bf16.mxu1 %v798_v2  ;;  %v637_v60 = vld [vmem:[%s1051_s9] ss:$0 sm:$0xff] }
  0x20   :  { %663 = vmatpush3.bf16.msra.mxu0 %v727_v20  ;;  %v638_v7 = vld [vmem:[%s1052_s10] ss:$0 sm:$0xff] }
  0x21   :  { %526 = vmatprep.subr.bf16.mxu0 %v736_v3  ;;  %v639_v11 = vld [vmem:[%s1054_s12] ss:$0 sm:$0xff] }
  0x23   :  { %227 = vmatmul.mubr.bf16.vlgmr.msra.gmra.mrb[0].mxu0 %v57_v22 }
  0x24   :  { %558 = vmatprep.mubr.bf16.mxu0 %v801_v6 }
  0xf6   :  { %v664_v25 = vpop.f32.mrb[0].mxu0 }
  0xf7   :  { %v665_v27 = vpop.f32.mrb[1].mxu0 }
  0xf8   :  { %v666_v28 = vadd.f32 %v665_v27, %v664_v25  ;;  %v667_v29 = vpop.f32.mrb[2].mxu0 }
  0xf9   :  { %v668_v30 = vpop.f32.mrb[3].mxu0 }
  0xfa   :  { %v229_v31 = vadd.f32 %v666_v28, %v609_v26 }
  0xfc   :  { %v234_v32 = vmax.f32 %v229_v31, 0.0 }
  0xfe   :  { %v235_v34 = vpack.c.bf16 %v234_v32, %v234_v32 }
 0x100   :  { %689 = vmatmul.mubr.msk.bf16.vlgmr.msra.gmra.mrb[0].mxu1 %vm275_vm1, %v235_v34 }
 0x101   :  { %693 = vmatpush3.bf16.msra.mxu1 %v732_v33  ;;  %696 = vmatprep.mubr.msk.bf16.mxu1 %vm799_vm0, %v798_v2 }
 0x102   :  { %694 = vmatprep.subr.bf16.mxu1 %v798_v2 }
 0x105   :  { %695 = vmatpush3.bf16.msra.mxu1 %v733_v35 }
 0x106   :  { %700 = vmatprep.subr.bf16.mxu1 %v798_v2 }
 0x1d3   :  { %v313_v37 = vpop.f32.mrb[0].mxu1 }
 0x1d4   :  { %v314_v38 = vadd.f32 %v626_v36, %v313_v37  ;;  %v690_v39 = vpop.f32.mrb[1].mxu1 }
 0x1d5   :  { %v316_v40 = vpop.f32.mrb[2].mxu1 }
 0x1d6   :  { %v319_v41 = vmax.f32 %v314_v38, 0.0  ;;  %v691_v42 = vpop.f32.mrb[3].mxu1 }
 0x1d8   :  { %v320_v43 = vpack.c.bf16 %v319_v41, %v319_v41 }
 0x1da   :  { %697 = vmatmul.mubr.msk.bf16.vlgmr.msra.gmra.mrb[4].mxu1 %vm344_vm2, %v320_v43 }
 0x1db   :  { %702 = vmatprep.mubr.msk.bf16.mxu1 %vm799_vm0, %v798_v2  ;;  %701 = vmatpush3.bf16.msra.mxu1 %v443_v53  ;;  %v734_v2 = vld [vmem:[%s1055_s13] ss:$8 sps:$4 sm:$0xff]   ;;  %s802_s13 = smov [#allocation4]  }
 0x1dc   :  { %527 = vmatpush1.bf16.msra.mxu0 %v734_v2  ;;  %s597_s24 = sshll.u32 %s802_s13, 4  ;;  %s598_s24 = int_to_ptr.vmem [resolvable:$true] %s597_s24 }
 0x1dd   :  { %528 = vmatprep.subr.bf16.mxu0 %v739_v4  ;;  %s750_s10 = scalar_lea.vmem %s598_s24, 128  ;;  %p755_p1 = scmp.lt.s32.totalorder %s598_s24, %s598_s24 }
 0x1de   :  { %p751_p0 = scmp.ne.s32.totalorder %s598_s24, %s750_s10  ;;  %p756_p2 = scmp.lt.s32.totalorder %s750_s10, %s750_s10 }
 0x1e0   :  { %529 = vmatpush1.bf16.msra.mxu0 %v737_v5  ;;  %p757_p3 = por %p756_p2, %p755_p1 }
 0x1e2   :  { %p758_p4 = pnand %p757_p3, %p751_p0 }
 0x2ad   :  { %v382_v45 = vpop.f32.mrb[4].mxu1 }
 0x2ae   :  { %v383_v46 = vadd.f32 %v632_v44, %v382_v45  ;;  %v698_v47 = vpop.f32.mrb[5].mxu1 }
 0x2af   :  { %v385_v48 = vpop.f32.mrb[6].mxu1 }
 0x2b0   :  { %v388_v49 = vmul.f32 0.5, %v383_v46  ;;  %v699_v50 = vpop.f32.mrb[7].mxu1 }
 0x2b2   :  { %v389_v51 = vmul.f32 1.442695, %v388_v49 }
 0x2b4   :  { %740 = vpow2.f32 %v389_v51 }
 0x2be   :  { %v741_v54 = vpop.eup %740 }
 0x2bf   :  { %393 = vrot.lane.b32.xlu0 %v741_v54, %s800_s28 }
 0x331   :  { %v394_v56 = vpop.permute.xlu0 %393 }
 0x332   :  { %v396_v57 = vmul.f32 %v394_v56, %v391_v55 }
 0x334   :  { %v397_v59 = vadd.f32 %v396_v57, %v383_v46 }
 0x336   :  { %v405_v61 = vmul.f32 %v636_v58, %v397_v59 }
 0x338   :  { %v413_v62 = vadd.f32 %v637_v60, %v405_v61 }
 0x33a   :  { %v429_v63 = vpack.c.bf16 %v413_v62, %v413_v62  ;;  %v414_v0 = vmul.f32 %v413_v62, %v413_v62 }
 0x33c   :  { %703 = vmatmul.mubr.msk.bf16.vlgmr.msra.gmra.mrb[8].mxu1 %vm415_vm4, %v429_v63  ;;  %v416_v1 = vsel %vm415_vm4, %v414_v0, 0.0 }
 0x33d   :  { %417 = vadd.xlane.f32.xlu0 %v416_v1 }
 0x3ca   :  { %v418_v8 = vpop.xlane.xlu0 %417 }
 0x3cb   :  { %v419_v9 = vmul.f32 0.5, %v418_v8 }
 0x3cd   :  { %v427_v10 = vadd.f32 %v638_v7, %v419_v9 }
 0x3cf   :  { %428 = vst [vmem:[#allocation4] sm:$0xff] %v427_v10 }
 0x40f   :  { %v479_v12 = vpop.f32.mrb[8].mxu1 }
 0x410   :  { %v480_v13 = vadd.f32 %v639_v11, %v479_v12  ;;  %v704_v14 = vpop.f32.mrb[9].mxu1 }
 0x411   :  { %v482_v15 = vpop.f32.mrb[10].mxu1 }
 0x412   :  { %v485_v16 = vmax.f32 %v480_v13, 0.0  ;;  %v705_v17 = vpop.f32.mrb[11].mxu1 }
 0x414   :  { %v486_v18 = vpack.c.bf16 %v485_v16, %v485_v16 }
 0x416   :  { %645 = vmatmul.mubr.msk.bf16.vlgmr.msra.gmra.mrb[4].mxu0 %vm344_vm2, %v486_v18 }
 0x417   :  { %761 = shalt.err (!%p758_p4)
}
 0x418   :  { %s762_s6 = scalar_lea.hbm %s1058_s16, 128 }
 0x419   :  { %p763_p5 = scmp.ne.s32.totalorder %s1058_s16, %s762_s6  ;;  %p766_p6 = scmp.lt.u32.totalorder %s762_s6, %s1058_s16 }
 0x41b   :  { %p768_p7 = pnand %p766_p6, %p763_p5 }
 0x41d   :  { %771 = shalt.err (!%p768_p7)
}
 0x41e   :  { %600 = dma.vmem_to_hbm [thread:$0]  %s598_s24, 128, %s1058_s16, [#allocation5]   ;;  %v493_v19 = vlaneseq  ;;  %v491_v22 = vld [vmem:[%s1056_s14] sm:$0x3] }
 0x41f   :  { %s803_s14 = smov [#allocation2]  }
 0x420   :  { %v494_v20 = vshrl.u32 %v493_v19, 7  ;;  %s587_s16 = sshll.u32 %s803_s14, 4  ;;  %s588_s16 = int_to_ptr.vmem [resolvable:$true] %s587_s16 }
 0x421   :  { %s772_s18 = scalar_lea.vmem %s588_s16, 256  ;;  %p777_p9 = scmp.lt.s32.totalorder %s588_s16, %s588_s16 }
 0x422   :  { %v495_v21 = vsub.s32 0, %v494_v20  ;;  %v499_v23 = vsub.s32 1, %v494_v20  ;;  %p773_p8 = scmp.ne.s32.totalorder %s588_s16, %s772_s18  ;;  %p778_p10 = scmp.lt.s32.totalorder %s772_s18, %s772_s18 }
 0x424   :  { %v496_v24 = vrot.slane %v491_v22, %v495_v21  ;;  %v500_v25 = vrot.slane %v491_v22, %v499_v23  ;;  %p779_p11 = por %p778_p10, %p777_p9 }
 0x426   :  { %p780_p12 = pnand %p779_p11, %p773_p8 }
 0x4e9   :  { %v560_v26 = vpop.f32.mrb[4].mxu0 }
 0x4ea   :  { %v561_v27 = vadd.f32 %v560_v26, %v496_v24  ;;  %v562_v28 = vpop.f32.mrb[5].mxu0 }
 0x4eb   :  { %v563_v29 = vadd.f32 %v562_v28, %v500_v25  ;;  %v564_v30 = vpop.f32.mrb[6].mxu0 }
 0x4ec   :  { %v646_v31 = vmul.f32 -1.442695, %v561_v27  ;;  %v565_v32 = vpop.f32.mrb[7].mxu0 }
 0x4ed   :  { %v647_v33 = vmul.f32 -1.442695, %v563_v29 }
 0x4ee   :  { %742 = vpow2.f32 %v646_v31 }
 0x4ef   :  { %744 = vpow2.f32 %v647_v33 }
 0x4f8   :  { %v743_v34 = vpop.eup %742 }
 0x4f9   :  { %v745_v35 = vpop.eup %744  ;;  %v573_v36 = vadd.f32 1.0, %v743_v34 }
 0x4fa   :  { %v574_v37 = vadd.f32 1.0, %v745_v35 }
 0x4fb   :  { %746 = vrcp.f32 %v573_v36 }
 0x4fc   :  { %748 = vrcp.f32 %v574_v37 }
 0x505   :  { %v747_v38 = vpop.eup %746 }
 0x506   :  { %v749_v39 = vpop.eup %748  ;;  %579 = vst [vmem:[#allocation2] sm:$0xff] %v747_v38 }
 0x507   :  { %580 = vst [vmem:[#allocation2 + $0x8] sm:$0xff] %v749_v39 }
 0x508   :  { %783 = shalt.err (!%p780_p12)
}
 0x509   :  { %s784_s11 = scalar_lea.hbm %s1057_s15, 256 }
 0x50a   :  { %p785_p13 = scmp.ne.s32.totalorder %s1057_s15, %s784_s11  ;;  %p788_p0 = scmp.lt.u32.totalorder %s784_s11, %s1057_s15 }
 0x50c   :  { %p790_p1 = pnand %p788_p0, %p785_p13 }
 0x50e   :  { %793 = shalt.err (!%p790_p1)
}
 0x50f   :  { %590 = dma.vmem_to_hbm [thread:$0]  %s588_s16, 256, %s1057_s15, [#allocation3]  }
 0x510   :  { %794 = dma.done.wait [#allocation3], 256  }
 0x511   :  { %795 = vsyncadd [#allocation3], 4294967040 }
 0x512   :  { %796 = dma.done.wait [#allocation5], 128  }
 0x513   :  { %797 = vsyncadd [#allocation5], 4294967168 }
 0x514   :  { %607 = vsyncpa [#allocation3], 1 }
 0x515   :  { %608 = vsyncpa [#allocation5], 1 }

</bundles_post_ra>
